<compile_context>
chip_gen: v5e
topology: v5e:2x2
jax: 0.10.0
libtpu: 0.0.40
codegen_flags: <defaults>
</compile_context>

<pallas_src>
import jax
import jax.numpy as jnp
from jax.experimental import pallas as pl
from jax.experimental.pallas import tpu as pltpu


def _concat_rows_kernel(yaw_ref, wind_ref, out_ref):
    # yaw_ref : (Bb, 1)   yaw value per row
    # wind_ref: (Bb, Wp)  flattened wind in lanes [0, W), zero padding after
    # out_ref : (Bb, Wp)  lane 0 = yaw, lanes [1, 1+W) = wind, rest = padding
    shifted = pltpu.roll(wind_ref[...], shift=1, axis=1)          # wind -> lanes 1..W (XLU)
    lane = jax.lax.broadcasted_iota(jnp.int32, out_ref.shape, 1)  # lane index per column
    out_ref[...] = jnp.where(lane == 0, yaw_ref[...], shifted)    # single full-width store


def dfac_space_extractor_forward_batched(yaw, freewind_measurements):
    """Batched forward.

    yaw: (B,) yaw readings; freewind_measurements: (B, ...) wind grids.
    Returns (B, 1 + W) float32 where row b = concat([yaw[b]], wind[b].flatten()).
    """
    yaw = jnp.asarray(yaw, jnp.float32).reshape(-1)
    B = yaw.shape[0]
    wind = jnp.asarray(freewind_measurements, jnp.float32).reshape(B, -1)
    W = wind.shape[1]

    if W == 0:
        # Degenerate case: the concat is just the yaw column; a zero-width
        # BlockSpec dim cannot lower, so stay in plain JAX.
        return yaw.reshape(B, 1)

    out_w = 1 + W
    Wp = ((out_w + 127) // 128) * 128          # lane-dense padded row width
    Bb = min(((B + 7) // 8) * 8, 2048)         # row block: sublane-full, VMEM-safe on v7x
    Bp = ((B + Bb - 1) // Bb) * Bb             # rows padded to a whole number of blocks

    yaw_p = jnp.zeros((Bp, 1), jnp.float32).at[:B, 0].set(yaw)
    wind_p = jnp.zeros((Bp, Wp), jnp.float32).at[:B, :W].set(wind)

    out = pl.pallas_call(
        _concat_rows_kernel,
        out_shape=jax.ShapeDtypeStruct((Bp, Wp), jnp.float32),
        grid=(Bp // Bb,),
        in_specs=[
            pl.BlockSpec((Bb, 1), lambda i: (i, 0)),
            pl.BlockSpec((Bb, Wp), lambda i: (i, 0)),
        ],
        out_specs=pl.BlockSpec((Bb, Wp), lambda i: (i, 0)),
    )(yaw_p, wind_p)

    return out[:B, :out_w]


def dfac_space_extractor_forward(yaw, freewind_measurements):
    """Single-observation forward, matching the PyTorch module exactly.

    yaw: scalar; freewind_measurements: any-shape array.
    Returns a 1-D float32 vector of length 1 + freewind_measurements.size.
    """
    yaw1 = jnp.asarray(yaw, jnp.float32).reshape(1)
    wind1 = jnp.asarray(freewind_measurements, jnp.float32).reshape(1, -1)
    return dfac_space_extractor_forward_batched(yaw1, wind1)[0]


if __name__ == "__main__":
    key = jax.random.PRNGKey(0)
    k_yaw, k_wind = jax.random.split(key)

    B = 8                      # batch of agents/timesteps (sublane-full)
    WIND_SHAPE = (2, 4)        # freewind measurement grid per observation
    W = WIND_SHAPE[0] * WIND_SHAPE[1]

    yaw_batch = jax.random.normal(k_yaw, (B,))
    wind_batch = jax.random.normal(k_wind, (B,) + WIND_SHAPE)

    # Batched kernel path.
    out_b = dfac_space_extractor_forward_batched(yaw_batch, wind_batch)
    out_b = jax.block_until_ready(out_b)

    ref_b = jnp.concatenate(
        [yaw_batch.astype(jnp.float32).reshape(B, 1),
         wind_batch.astype(jnp.float32).reshape(B, -1)],
        axis=1,
    )
    assert out_b.shape == ref_b.shape == (B, 1 + W)
    assert jnp.allclose(out_b, ref_b), (out_b, ref_b)

    # Single-observation path (mirrors the module's np.concatenate semantics).
    local_obs = {"yaw": yaw_batch[0]}
    global_obs = {"freewind_measurements": wind_batch[0]}
    out_1 = dfac_space_extractor_forward(
        local_obs["yaw"], global_obs["freewind_measurements"]
    )
    out_1 = jax.block_until_ready(out_1)

    ref_1 = jnp.concatenate(
        [jnp.asarray(local_obs["yaw"], jnp.float32).reshape(1),
         jnp.asarray(global_obs["freewind_measurements"], jnp.float32).reshape(-1)],
        axis=0,
    )
    assert out_1.shape == ref_1.shape == (1 + W,)
    assert jnp.allclose(out_1, ref_1), (out_1, ref_1)

    print("KERNEL_OK")
</pallas_src>

<mosaic_0001>
module attributes {stable_mosaic.version = 11 : i64} {
  func.func @_concat_rows_kernel(%arg0: i32, %arg1: memref<8x1xf32, #tpu.memory_space<vmem>>, %arg2: memref<8x128xf32, #tpu.memory_space<vmem>>, %arg3: memref<8x128xf32, #tpu.memory_space<vmem>>) attributes {dimension_semantics = [#tpu.dimension_semantics<arbitrary>], iteration_bounds = array<i64: 1>, scalar_prefetch = 0 : i64, scratch_operands = 0 : i64, tpu.core_type = #tpu.core_type<tc>, window_params = [{transform_indices = @transform_0, window_bounds = array<i64: 8, 1>}, {transform_indices = @transform_1, window_bounds = array<i64: 8, 128>}, {transform_indices = @transform_2, window_bounds = array<i64: 8, 128>}]} {
    %c0 = arith.constant 0 : index
    %c0_0 = arith.constant 0 : index
    %0 = vector.load %arg2[%c0, %c0_0] : memref<8x128xf32, #tpu.memory_space<vmem>>, vector<8x128xf32>
    %c1_i32 = arith.constant 1 : i32
    %1 = tpu.dynamic_rotate %0 by %c1_i32 dim 1 : vector<8x128xf32>, i32 -> vector<8x128xf32>
    %2 = tpu.iota {dimensions = array<i32: 1>} : vector<8x128xi32>
    %c0_i32 = arith.constant 0 : i32
    %3 = vector.broadcast %c0_i32 : i32 to vector<8x128xi32>
    %4 = arith.cmpi eq, %2, %3 : vector<8x128xi32>
    %c0_1 = arith.constant 0 : index
    %c0_2 = arith.constant 0 : index
    %5 = vector.load %arg1[%c0_1, %c0_2] : memref<8x1xf32, #tpu.memory_space<vmem>>, vector<8x1xf32>
    %6 = vector.shape_cast %5 : vector<8x1xf32> to vector<8x1xf32>
    %7 = vector.broadcast %6 : vector<8x1xf32> to vector<8x128xf32>
    %8 = arith.select %4, %7, %1 : vector<8x128xi1>, vector<8x128xf32>
    %c0_3 = arith.constant 0 : index
    %c0_4 = arith.constant 0 : index
    %9 = vector.load %arg3[%c0_3, %c0_4] : memref<8x128xf32, #tpu.memory_space<vmem>>, vector<8x128xf32>
    tpu.vector_store %arg3[%c0_3, %c0_4], %8 {strides = array<i32>} : memref<8x128xf32, #tpu.memory_space<vmem>>, vector<8x128xf32>,
    return
  }
  func.func @transform_0(%arg0: i32) -> (i32, i32) {
    %c0_i32 = arith.constant 0 : i32
    %c0_i32_0 = arith.constant 0 : i32
    return %arg0, %c0_i32 : i32, i32
  }
  func.func @transform_1(%arg0: i32) -> (i32, i32) {
    %c0_i32 = arith.constant 0 : i32
    %c0_i32_0 = arith.constant 0 : i32
    return %arg0, %c0_i32 : i32, i32
  }
  func.func @transform_2(%arg0: i32) -> (i32, i32) {
    %c0_i32 = arith.constant 0 : i32
    %c0_i32_0 = arith.constant 0 : i32
    return %arg0, %c0_i32 : i32, i32
  }
}

</mosaic_0001>

<bundles_post_ra>
// kernel: tpu_custom_call.1
= control target key start
LH: loop header
LB: loop body
LE: loop exit
PB: predicated region body
PF: predicated region fallthrough
CT: control target
= control target key end

     0   :  { %s99_s0 = inlined_call_operand.vmem [shape: f32[8,1], index: 0, kind: input, shape index: {}]   ;;  %s100_s1 = inlined_call_operand.vmem [shape: f32[8,128], index: 1, kind: input, shape index: {}]   ;;  %s101_s2 = inlined_call_operand.hbm [shape: f32[8,128], index: 2, kind: output, shape index: {}]  }
   0x1   :  { %v12_v0 = vld [vmem:[%s100_s1] sm:$0xff] }
   0x2   :  { %7 = vsyncpa [#allocation3], 0  ;;  %s72_s11 = smov 1   ;;  %v73_v1 = vmov 0   ;;  %v18_v2 = vld [vmem:[%s99_s0] sm:$0xff]  ;;  %v15_v3 = vlaneseq  ;;  %s74_s14 = smov [#allocation2]  }
   0x3   :  { %13 = vrot.lane.b32.xlu0 %v12_v0, %s72_s11  ;;  %s31_s15 = sshll.u32 %s74_s14, 4  ;;  %s33_s18 = sshll.u32 %s101_s2, 4  ;;  %s32_s15 = int_to_ptr.vmem [resolvable:$true] %s31_s15  ;;  %s34_s18 = int_to_ptr.hbm [resolvable:$true] %s33_s18 }
   0x4   :  { %45 = vset.pattern.permute.xlu0 %v73_v1  ;;  %v16_v5 = vand.u32 127, %v15_v3 }
   0x6   :  { %vm17_vm0 = vcmp.eq.s32.totalorder %v16_v5, 0 }
   0xb   :  { %21 = vperm.xlu0 %45, %v18_v2  }
  0x75   :  { %v14_v4 = vpop.permute.xlu0 %13 }
  0x7d   :  { %v22_v6 = vpop.permute.xlu0 %21 }
  0x7e   :  { %v24_v7 = vsel %vm17_vm0, %v22_v6, %v14_v4 }
  0x7f   :  { %25 = vst [vmem:[#allocation2] sm:$0xff] %v24_v7 }
  0x80   :  { %36 = dma.vmem_to_hbm [thread:$0]  %s32_s15, 128, %s34_s18, [#allocation3]  }
  0x81   :  { %70 = dma.done.wait [#allocation3], 128  }
  0x82   :  { %71 = vsyncadd [#allocation3], 4294967168 }
  0x83   :  { %41 = vsyncpa [#allocation3], 1 }

</bundles_post_ra>
